<compile_context>
chip_gen: v7x
topology: tpu7x:2x2x1
jax: 0.10.0
libtpu: 0.0.40
codegen_flags: <defaults>
</compile_context>

<pallas_src>
import functools

import jax
import jax.numpy as jnp
from jax.experimental import pallas as pl
from jax.experimental.pallas import tpu as pltpu

_SUBLANES = 8
_LANES = 128
_GRANULE = _SUBLANES * _LANES  # 1024 batch elements per dense (8, 128) vreg


def _linear_kernel(params_ref, x_ref, o_ref):
    # params_ref : SMEM (in_f + 1,)          -> [w_0, ..., w_{in_f-1}, b]
    # x_ref      : VMEM (in_f, 8, tile // 8) -> batch folded onto sublanes+lanes
    # o_ref      : VMEM (8, tile // 8)
    in_f = x_ref.shape[0]
    acc = x_ref[0] * params_ref[0]
    for k in range(1, in_f):                 # in_f == 2 -> fully unrolled VPU FMAs
        acc = acc + x_ref[k] * params_ref[k]
    o_ref[...] = acc + params_ref[in_f]      # + bias (all f32, no extra casts)


def _round_up(a, b):
    return ((a + b - 1) // b) * b


@functools.partial(jax.jit, static_argnames=("tile_n",))
def one_layer_forward(x, weight, bias, *, tile_n=512 * 1024):
    """Pallas forward for OneLayerBinaryClassifier: y = x @ W^T + b.

    x:      (N, in_f) float32
    weight: (1, in_f) float32   (fc1.weight)
    bias:   (1,)      float32   (fc1.bias)
    returns (N, 1)    logits (same semantics as nn.Linear(2, 1))
    """
    n, in_f = x.shape
    out_f = weight.shape[0]
    assert out_f == 1, "OneLayerBinaryClassifier has a single output logit"

    # Batch padding / tiling (all static Python ints under jit).
    n_pad = _round_up(max(n, _GRANULE), _GRANULE)
    tile = _round_up(min(tile_n, n_pad), _GRANULE)
    if tile >= n_pad and n_pad > _GRANULE:
        # Keep >= 2 blocks so a megacore chip (v7x) can shard the grid.
        tile = _round_up(pl.cdiv(n_pad, 2), _GRANULE)
    n_pad = _round_up(n_pad, tile)
    grid = n_pad // tile
    tile_l = tile // _SUBLANES

    # (N, in_f) -> (in_f, N): features leading, batch contiguous.
    # TODO(synk): if upstream keeps activations feature-major (in_f, N) this
    # transpose pass disappears entirely (or could be fused via
    # allow_input_fusion); kept explicit here to preserve the (N, 2) interface.
    x_t = jnp.transpose(x).astype(jnp.float32)
    if n_pad > n:
        # Pad only the tail -- no full-buffer zero-init write pass.
        x_t = jnp.concatenate(
            [x_t, jnp.zeros((in_f, n_pad - n), jnp.float32)], axis=1)
    # Metadata-only reshape to the sublane-dense (in_f, 8, n_pad // 8) layout.
    x_t = x_t.reshape(in_f, _SUBLANES, n_pad // _SUBLANES)

    # [w_0, ..., w_{in_f-1}, b] -> SMEM via scalar prefetch.
    params = jnp.concatenate(
        [weight.reshape(-1), bias.reshape(-1)]).astype(jnp.float32)

    y = pl.pallas_call(
        _linear_kernel,
        out_shape=jax.ShapeDtypeStruct(
            (_SUBLANES, n_pad // _SUBLANES), jnp.float32),
        grid_spec=pltpu.PrefetchScalarGridSpec(
            num_scalar_prefetch=1,
            grid=(grid,),
            in_specs=[
                pl.BlockSpec((in_f, _SUBLANES, tile_l),
                             lambda i, params_ref: (0, 0, i)),
            ],
            out_specs=pl.BlockSpec((_SUBLANES, tile_l),
                                   lambda i, params_ref: (0, i)),
        ),
        compiler_params=pltpu.CompilerParams(
            dimension_semantics=("parallel",),
            # 12 MiB double-buffered footprint at the default tile; raise the
            # scoped limit above v5e's 16 MiB default so big tiles fit on all
            # generations (well under v7x's 64 MiB physical VMEM).
            vmem_limit_bytes=40 * 1024 * 1024,
        ),
    )(params, x_t)

    # (8, n_pad // 8) -> flat (n_pad,) -> (N, 1) to match nn.Linear layout.
    return y.reshape(n_pad)[:n].reshape(n, 1).astype(x.dtype)


if __name__ == "__main__":
    key = jax.random.PRNGKey(0)
    k_x, k_w, k_b = jax.random.split(key, 3)

    N, IN_F, OUT_F = 8, 2, 1

    # Deterministic parameter init (mimics nn.Linear uniform(-1/sqrt(in), 1/sqrt(in)))
    bound = 1.0 / jnp.sqrt(jnp.float32(IN_F))
    weight = jax.random.uniform(k_w, (OUT_F, IN_F), jnp.float32, -bound, bound)
    bias = jax.random.uniform(k_b, (OUT_F,), jnp.float32, -bound, bound)
    x = jax.random.normal(k_x, (N, IN_F), jnp.float32)

    y = one_layer_forward(x, weight, bias)
    jax.block_until_ready(y)
    y_ref = x @ weight.T + bias
    assert y.shape == (N, OUT_F)
    assert jnp.allclose(y, y_ref, atol=1e-5, rtol=1e-5)

    # Multiple blocks with an explicit small tile (grid > 1) still match.
    x2 = jax.random.normal(k_x, (3000, IN_F), jnp.float32)
    y2 = one_layer_forward(x2, weight, bias, tile_n=2048)
    jax.block_until_ready(y2)
    y2_ref = x2 @ weight.T + bias
    assert y2.shape == (3000, OUT_F)
    assert jnp.allclose(y2, y2_ref, atol=1e-5, rtol=1e-5)

    # Default big-tile path with the grid>=2 auto-split (n_pad > one granule).
    x3 = jax.random.normal(k_x, (2500, IN_F), jnp.float32)
    y3 = one_layer_forward(x3, weight, bias)
    jax.block_until_ready(y3)
    y3_ref = x3 @ weight.T + bias
    assert y3.shape == (2500, OUT_F)
    assert jnp.allclose(y3, y3_ref, atol=1e-5, rtol=1e-5)

    # TODO(synk): predict()/calculate_loss() (sigmoid round / BCEWithLogitsLoss)
    # are not part of forward() and are left out of the kernel.
    print("KERNEL_OK")
</pallas_src>

<mosaic_0001>
module attributes {stable_mosaic.version = 11 : i64} {
  func.func @_linear_kernel(%arg0: i32, %arg1: memref<3xf32, #tpu.memory_space<smem>>, %arg2: memref<2x8x128xf32, #tpu.memory_space<vmem>>, %arg3: memref<8x128xf32, #tpu.memory_space<vmem>>) attributes {dimension_semantics = [#tpu.dimension_semantics<parallel>], iteration_bounds = array<i64: 1>, scalar_prefetch = 1 : i64, scratch_operands = 0 : i64, tpu.core_type = #tpu.core_type<tc>, window_params = [{transform_indices = @transform_0, window_bounds = array<i64: 2, 8, 128>}, {transform_indices = @transform_1, window_bounds = array<i64: 8, 128>}]} {
    %c0 = arith.constant 0 : index
    %c0_0 = arith.constant 0 : index
    %c0_1 = arith.constant 0 : index
    %0 = vector.load %arg2[%c0, %c0_0, %c0_1] : memref<2x8x128xf32, #tpu.memory_space<vmem>>, vector<1x8x128xf32>
    %1 = vector.shape_cast %0 : vector<1x8x128xf32> to vector<8x128xf32>
    %c0_2 = arith.constant 0 : index
    %2 = memref.load %arg1[%c0_2] : memref<3xf32, #tpu.memory_space<smem>>
    %3 = vector.broadcast %2 : f32 to vector<8x128xf32>
    %4 = arith.mulf %1, %3 : vector<8x128xf32>
    %c1 = arith.constant 1 : index
    %c0_3 = arith.constant 0 : index
    %c0_4 = arith.constant 0 : index
    %5 = vector.load %arg2[%c1, %c0_3, %c0_4] : memref<2x8x128xf32, #tpu.memory_space<vmem>>, vector<1x8x128xf32>
    %6 = vector.shape_cast %5 : vector<1x8x128xf32> to vector<8x128xf32>
    %c1_5 = arith.constant 1 : index
    %7 = memref.load %arg1[%c1_5] : memref<3xf32, #tpu.memory_space<smem>>
    %8 = vector.broadcast %7 : f32 to vector<8x128xf32>
    %9 = arith.mulf %6, %8 : vector<8x128xf32>
    %10 = arith.addf %4, %9 : vector<8x128xf32>
    %c2 = arith.constant 2 : index
    %11 = memref.load %arg1[%c2] : memref<3xf32, #tpu.memory_space<smem>>
    %12 = vector.broadcast %11 : f32 to vector<8x128xf32>
    %13 = arith.addf %10, %12 : vector<8x128xf32>
    %c0_6 = arith.constant 0 : index
    %c0_7 = arith.constant 0 : index
    %14 = vector.load %arg3[%c0_6, %c0_7] : memref<8x128xf32, #tpu.memory_space<vmem>>, vector<8x128xf32>
    tpu.vector_store %arg3[%c0_6, %c0_7], %13 {strides = array<i32>} : memref<8x128xf32, #tpu.memory_space<vmem>>, vector<8x128xf32>,
    return
  }
  func.func @transform_0(%arg0: i32, %arg1: memref<3xf32, #tpu.memory_space<smem>>) -> (i32, i32, i32) {
    %c0_i32 = arith.constant 0 : i32
    %c0_i32_0 = arith.constant 0 : i32
    %c0_i32_1 = arith.constant 0 : i32
    return %c0_i32, %c0_i32_0, %arg0 : i32, i32, i32
  }
  func.func @transform_1(%arg0: i32, %arg1: memref<3xf32, #tpu.memory_space<smem>>) -> (i32, i32) {
    %c0_i32 = arith.constant 0 : i32
    %c0_i32_0 = arith.constant 0 : i32
    return %c0_i32, %arg0 : i32, i32
  }
}

</mosaic_0001>

<bundles_post_ra>
// kernel: one_layer_forward.1
= control target key start
LH: loop header
LB: loop body
LE: loop exit
PB: predicated region body
PF: predicated region fallthrough
CT: control target
= control target key end

     0   :  { %s79_s0 = inlined_call_operand.vmem [shape: f32[3], index: 0, kind: input, shape index: {}]   ;;  %s80_s1 = inlined_call_operand.vmem [shape: f32[2,8,128], index: 1, kind: input, shape index: {}]   ;;  %s81_s2 = inlined_call_operand.vmem [shape: f32[8,128], index: 2, kind: output, shape index: {}]  }
   0x1   :  { %s7_s11 = sshll.u32 %s79_s0, 4  ;;  %s8_s11 = int_to_ptr.vmem [resolvable:$true] %s7_s11 }
   0x2   :  { %s37_s12 = scalar_lea.vmem %s8_s11, 16  ;;  %p42_p1 = scmp.lt.s32.totalorder %s8_s11, %s8_s11 }
   0x3   :  { %p38_p0 = scmp.ne.s32.totalorder %s8_s11, %s37_s12  ;;  %p43_p2 = scmp.lt.s32.totalorder %s37_s12, %s37_s12 }
   0x5   :  { %p44_p3 = por %p43_p2, %p42_p1 }
   0x7   :  { %p45_p4 = pnand %p44_p3, %p38_p0 }
   0x9   :  { %48 = shalt.err (!%p45_p4)  }
   0xa   :  { %s51_s13 = smov [#allocation3]  }
   0xb   :  { %10 = dma.vmem_to_smem %s8_s11, 16, %s51_s13, [#allocation2] }
   0xc   :  { %49 = dma.done.wait [#allocation2], 16 }
   0xd   :  { %50 = vsyncadd [#allocation2], 4294967280 }
   0xe   :  { %12 = sfence }
   0xf   :  { %s16_s14 = sld [smem:[#allocation3]]  ;;  %s34_s15 = sld [smem:[#allocation3 + $0x1]]  ;;  %v15_v0 = vld [vmem:[%s80_s1] sm:$0xff]  ;;  %v33_v1 = vld [vmem:[%s80_s1 + $0x8] sm:$0xff] }
  0x10   :  { %s35_s16 = sld [smem:[#allocation3 + $0x2]] }
  0x15   :  { %v17_v2 = vstv %s16_s14  ;;  %v22_v3 = vstv %s34_s15 }
  0x16   :  { %v18_v4 = vmul.f32 %v17_v2, %v15_v0  ;;  %v23_v5 = vmul.f32 %v33_v1, %v22_v3  ;;  %v26_v6 = vstv %s35_s16 }
  0x18   :  { %v24_v7 = vadd.f32 %v23_v5, %v18_v4 }
  0x1a   :  { %v27_v8 = vadd.f32 %v26_v6, %v24_v7 }
  0x1c   :  { %28 = vst [vmem:[%s81_s2] sm:$0xff] %v27_v8 }

</bundles_post_ra>
